<compile_context>
chip_gen: v7x
topology: tpu7x:2x2x1
jax: 0.10.0
libtpu: 0.0.40
codegen_flags: <defaults>
</compile_context>

<pallas_src>
import functools
import math

import jax
import jax.numpy as jnp
from jax.experimental import pallas as pl
from jax.experimental.pallas import tpu as pltpu

EPS = 1e-5
ADD = True                 # Config.add_layer
LANES = 128                # TPU vreg lane width

# 2048 packed rows * 128 lanes * 4 B = 1 MiB per block.  Double-buffered input +
# output blocks (~4 MiB) plus full-tile f32 intermediates stay well under the
# 32 MiB VMEM limit below on every generation, while each step is big enough to
# amortize the ~0.35 us fixed per-grid-step overhead (>=85% of HBM roofline in
# measured f32 streaming sweeps).
TARGET_BLOCK_ROWS = 2048
VMEM_LIMIT_BYTES = 32 * 1024 * 1024   # raises v5e's 16 MiB scoped default; <= physical everywhere


def _round_up(a: int, b: int) -> int:
    return ((a + b - 1) // b) * b


def _packed_add_layernorm_kernel(seg_ref, x_ref, o_ref, *, eps_eff):
    """Fused (x + x) + LayerNorm on a lane-dense (tile, pack*d_model) block.

    `pack` original rows of width d_model share one 128-lane row, so the LN
    reduction is a segmented (per-d_model-lane-group) reduction, done as matmuls
    against a block-diagonal matrix on the otherwise-idle MXU.  seg_ref holds
    that matrix (entries 1/d_model, exact in bf16) and stays VMEM-resident for
    the whole grid (constant block index).  The residual self-add is folded into
    eps (LayerNorm(2x, eps) == LN(x, eps/4)); a fresh nn.LayerNorm has weight=1,
    bias=0, so no affine term is applied.
    """
    x = x_ref[...].astype(jnp.float32)          # (tile, 128) f32
    seg = seg_ref[...]                          # (128, 128) bf16, resident

    def seg_mean(v):
        # MXU is bf16-in / f32-accumulate; a plain bf16 cast of `v` would cost
        # ~2^-9 relative error, so use a hi/lo compensated split (two cheap
        # (tile,128)x(128,128) matmuls -> ~f32-accurate segment means; the
        # 1/d_model scale is already baked into `seg`).
        hi = v.astype(jnp.bfloat16)
        lo = (v - hi.astype(jnp.float32)).astype(jnp.bfloat16)
        s = jnp.dot(hi, seg, preferred_element_type=jnp.float32)
        return s + jnp.dot(lo, seg, preferred_element_type=jnp.float32)

    mean = seg_mean(x)                          # per-segment mean, broadcast per lane
    centered = x - mean
    var = seg_mean(centered * centered)         # reuse `centered`
    inv = jax.lax.rsqrt(var + jnp.float32(eps_eff))
    o_ref[...] = (centered * inv).astype(o_ref.dtype)


def _rowwise_add_layernorm_kernel(x_ref, o_ref, *, eps_eff):
    """Fallback: d_model already lane-dense (or not a divisor of 128): plain per-row LN."""
    x = x_ref[...].astype(jnp.float32)
    mean = jnp.mean(x, axis=-1, keepdims=True)
    centered = x - mean
    var = jnp.mean(centered * centered, axis=-1, keepdims=True)
    inv = jax.lax.rsqrt(var + jnp.float32(eps_eff))
    o_ref[...] = (centered * inv).astype(o_ref.dtype)


def layer_process(x, *, add=ADD, eps=EPS, block_rows=TARGET_BLOCK_ROWS, interpret=False):
    """x: [..., d_model] -> LayerNorm(x + x) with identity affine (same shape/dtype)."""
    orig_shape = x.shape
    d_model = orig_shape[-1]
    rows = math.prod(orig_shape[:-1]) if len(orig_shape) > 1 else 1
    x2d = x.reshape(rows, d_model)

    # Lane packing: `pack` consecutive rows share one 128-lane row so loads and
    # stores are unmasked and full-width (free row-major reshape).
    if d_model < LANES and LANES % d_model == 0:
        pack = LANES // d_model
    else:
        pack = 1   # TODO(synk): d_model < 128 not dividing 128 still emits masked stores here.
    p_total = pack * d_model

    rows_pack = _round_up(rows, pack)
    if rows_pack != rows:
        # Ragged row count only; LN of a zero row is 0 (no NaN).
        x2d = jnp.pad(x2d, ((0, rows_pack - rows), (0, 0)))
    packed_rows = rows_pack // pack
    xp = x2d.reshape(packed_rows, p_total)       # contiguous row-major reshape, no copy

    # Row tile: multiple of 16 (clean bf16 sublane packing for the MXU operand,
    # satisfies the (8,128) rule).  The grid uses cdiv so the tail block is
    # masked by Pallas instead of padding the whole tensor in HBM.
    tile = min(block_rows, _round_up(packed_rows, 16))
    tile = _round_up(tile, 16)
    grid = (pl.cdiv(packed_rows, tile),)

    # Fold the residual self-add:  LayerNorm(2x, eps) == LN(x, eps/4).
    eps_eff = eps / 4.0 if add else eps

    x_spec = pl.BlockSpec((tile, p_total), lambda i: (i, 0))
    out_spec = pl.BlockSpec((tile, p_total), lambda i: (i, 0))

    if pack > 1:
        # Block-diagonal segmented-reduction matrix with 1/d_model folded in
        # (d_model divides 128 => power of two => 1/d_model exact in bf16).
        # Built once in the wrapper; constant block index keeps it VMEM-resident
        # instead of being rebuilt/re-DMA'd every grid step.
        row_id = jax.lax.broadcasted_iota(jnp.int32, (p_total, p_total), 0) // d_model
        col_id = jax.lax.broadcasted_iota(jnp.int32, (p_total, p_total), 1) // d_model
        seg = jnp.where(row_id == col_id, 1.0 / d_model, 0.0).astype(jnp.bfloat16)

        kernel = functools.partial(_packed_add_layernorm_kernel, eps_eff=eps_eff)
        in_specs = [pl.BlockSpec((p_total, p_total), lambda i: (0, 0)), x_spec]
        args = (seg, xp)
    else:
        kernel = functools.partial(_rowwise_add_layernorm_kernel, eps_eff=eps_eff)
        in_specs = [x_spec]
        args = (xp,)

    out = pl.pallas_call(
        kernel,
        out_shape=jax.ShapeDtypeStruct((packed_rows, p_total), x.dtype),
        grid_spec=pltpu.PrefetchScalarGridSpec(
            num_scalar_prefetch=0,
            grid=grid,
            in_specs=in_specs,
            out_specs=out_spec,
        ),
        compiler_params=pltpu.CompilerParams(
            dimension_semantics=("parallel",),
            vmem_limit_bytes=VMEM_LIMIT_BYTES,
        ),
        interpret=interpret,
    )(*args)

    out = out.reshape(rows_pack, d_model)
    if rows_pack != rows:
        out = out[:rows]
    return out.reshape(orig_shape)


def _reference(x, add=ADD, eps=EPS):
    """Literal PyTorch semantics: x + x, then LayerNorm(d_model) with gamma=1, beta=0."""
    if add:
        x = x + x
    mean = jnp.mean(x, axis=-1, keepdims=True)
    var = jnp.mean((x - mean) ** 2, axis=-1, keepdims=True)
    return (x - mean) * jax.lax.rsqrt(var + eps)


if __name__ == "__main__":
    # Module config: num_head=4, hidden_size=8 -> d_model = 32.
    num_head, hidden_size = 4, 8
    d_model = num_head * hidden_size

    key = jax.random.PRNGKey(0)
    cases = [
        (2, 8, d_model),       # module-sized example (batch=2, seq=8, d_model=32)
        (8, 2048, d_model),    # multi-step grid: 4096 packed rows -> 2 full 2048-row tiles
        (1, 9000, d_model),    # cdiv tail: 2250 packed rows -> one full tile + masked tail block
        (3, 37, d_model),      # ragged row count: exercises pack padding + masked tail
        (2, 64, 128),          # pack == 1 fallback path (already lane-dense)
    ]
    for shape in cases:
        key, sub = jax.random.split(key)
        x = jax.random.normal(sub, shape, dtype=jnp.float32)
        out = jax.block_until_ready(layer_process(x))
        ref = _reference(x)
        assert out.shape == x.shape, f"shape mismatch for {shape}"
        assert jnp.allclose(out, ref, atol=1e-5, rtol=1e-5), f"mismatch vs reference for {shape}"

    print("KERNEL_OK")
</pallas_src>

<mosaic_0001>
module attributes {stable_mosaic.version = 11 : i64} {
  func.func @_packed_add_layernorm_kernel(%arg0: i32, %arg1: memref<128x128xbf16, #tpu.memory_space<vmem>>, %arg2: memref<16x128xf32, #tpu.memory_space<vmem>>, %arg3: memref<16x128xf32, #tpu.memory_space<vmem>>) attributes {dimension_semantics = [#tpu.dimension_semantics<parallel>], iteration_bounds = array<i64: 1>, scalar_prefetch = 0 : i64, scratch_operands = 0 : i64, tpu.core_type = #tpu.core_type<tc>, window_params = [{pipeline_mode = #tpu.pipeline_mode<synchronous>, transform_indices = @transform_0, window_bounds = array<i64: 128, 128>}, {transform_indices = @transform_1, window_bounds = array<i64: 16, 128>}, {transform_indices = @transform_2, window_bounds = array<i64: 16, 128>}]} {
    %c0 = arith.constant 0 : index
    %c0_0 = arith.constant 0 : index
    %0 = vector.load %arg2[%c0, %c0_0] : memref<16x128xf32, #tpu.memory_space<vmem>>, vector<16x128xf32>
    %c0_1 = arith.constant 0 : index
    %c0_2 = arith.constant 0 : index
    %1 = vector.load %arg1[%c0_1, %c0_2] : memref<128x128xbf16, #tpu.memory_space<vmem>>, vector<128x128xbf16>
    %2 = arith.truncf %0 : vector<16x128xf32> to vector<16x128xbf16>
    %3 = arith.extf %2 : vector<16x128xbf16> to vector<16x128xf32>
    %4 = arith.subf %0, %3 : vector<16x128xf32>
    %5 = arith.truncf %4 : vector<16x128xf32> to vector<16x128xbf16>
    %cst = arith.constant dense<0.000000e+00> : vector<16x128xf32>
    %6 = tpu.matmul %2, %1, %cst {dimension_numbers = #tpu.dot_dimension_numbers<[1], [0], [0], [1], [0, 0, 1, 1], [], []>} : vector<16x128xbf16>, vector<128x128xbf16>, vector<16x128xf32> -> vector<16x128xf32>
    %cst_3 = arith.constant dense<0.000000e+00> : vector<16x128xf32>
    %7 = tpu.matmul %5, %1, %cst_3 {dimension_numbers = #tpu.dot_dimension_numbers<[1], [0], [0], [1], [0, 0, 1, 1], [], []>} : vector<16x128xbf16>, vector<128x128xbf16>, vector<16x128xf32> -> vector<16x128xf32>
    %8 = arith.addf %6, %7 : vector<16x128xf32>
    %9 = arith.subf %0, %8 : vector<16x128xf32>
    %10 = arith.mulf %9, %9 : vector<16x128xf32>
    %11 = arith.truncf %10 : vector<16x128xf32> to vector<16x128xbf16>
    %12 = arith.extf %11 : vector<16x128xbf16> to vector<16x128xf32>
    %13 = arith.subf %10, %12 : vector<16x128xf32>
    %14 = arith.truncf %13 : vector<16x128xf32> to vector<16x128xbf16>
    %cst_4 = arith.constant dense<0.000000e+00> : vector<16x128xf32>
    %15 = tpu.matmul %11, %1, %cst_4 {dimension_numbers = #tpu.dot_dimension_numbers<[1], [0], [0], [1], [0, 0, 1, 1], [], []>} : vector<16x128xbf16>, vector<128x128xbf16>, vector<16x128xf32> -> vector<16x128xf32>
    %cst_5 = arith.constant dense<0.000000e+00> : vector<16x128xf32>
    %16 = tpu.matmul %14, %1, %cst_5 {dimension_numbers = #tpu.dot_dimension_numbers<[1], [0], [0], [1], [0, 0, 1, 1], [], []>} : vector<16x128xbf16>, vector<128x128xbf16>, vector<16x128xf32> -> vector<16x128xf32>
    %17 = arith.addf %15, %16 : vector<16x128xf32>
    %cst_6 = arith.constant 2.500000e-06 : f32
    %18 = vector.broadcast %cst_6 : f32 to vector<16x128xf32>
    %19 = arith.addf %17, %18 : vector<16x128xf32>
    %20 = math.rsqrt %19 : vector<16x128xf32>
    %21 = arith.mulf %9, %20 : vector<16x128xf32>
    %c0_7 = arith.constant 0 : index
    %c0_8 = arith.constant 0 : index
    %22 = vector.load %arg3[%c0_7, %c0_8] : memref<16x128xf32, #tpu.memory_space<vmem>>, vector<16x128xf32>
    tpu.vector_store %arg3[%c0_7, %c0_8], %21 {strides = array<i32>} : memref<16x128xf32, #tpu.memory_space<vmem>>, vector<16x128xf32>,
    return
  }
  func.func @transform_0(%arg0: i32) -> (i32, i32) {
    %c0_i32 = arith.constant 0 : i32
    %c0_i32_0 = arith.constant 0 : i32
    %c0_i32_1 = arith.constant 0 : i32
    return %c0_i32, %c0_i32_0 : i32, i32
  }
  func.func @transform_1(%arg0: i32) -> (i32, i32) {
    %c0_i32 = arith.constant 0 : i32
    %c0_i32_0 = arith.constant 0 : i32
    return %arg0, %c0_i32 : i32, i32
  }
  func.func @transform_2(%arg0: i32) -> (i32, i32) {
    %c0_i32 = arith.constant 0 : i32
    %c0_i32_0 = arith.constant 0 : i32
    return %arg0, %c0_i32 : i32, i32
  }
}

</mosaic_0001>

<bundles_post_ra>
// kernel: tpu_custom_call.1
= control target key start
LH: loop header
LB: loop body
LE: loop exit
PB: predicated region body
PF: predicated region fallthrough
CT: control target
= control target key end

     0   :  { %7 = vsyncpa [#allocation3], 0  ;;  %s675_s0 = inlined_call_operand.hbm [shape: bf16[128,128], index: 0, kind: input, shape index: {}]   ;;  %s676_s1 = inlined_call_operand.hbm [shape: f32[4,128], index: 1, kind: input, shape index: {}]   ;;  %s677_s2 = inlined_call_operand.hbm [shape: f32[4,128], index: 2, kind: output, shape index: {}]  }
   0x1   :  { %8 = vsyncpa [#allocation6], 0 }
   0x2   :  { %9 = vsyncpa [#allocation4], 0  ;;  %s532_s9 = smov [#allocation2]   ;;  %s460_s13 = scalar_lea.hbm %s675_s0, 1024 }
   0x3   :  { %s15_s10 = sshll.u32 %s532_s9, 4  ;;  %p461_p0 = scmp.ne.s32.totalorder %s675_s0, %s460_s13  ;;  %s16_s10 = int_to_ptr.vmem [resolvable:$true] %s15_s10 }
   0x4   :  { %p464_p1 = scmp.lt.u32.totalorder %s460_s13, %s675_s0 }
   0x6   :  { %p466_p2 = pnand %p464_p1, %p461_p0 }
   0x8   :  { %469 = shalt.err (!%p466_p2)
}
   0x9   :  { %s470_s18 = scalar_lea.vmem %s16_s10, 1024  ;;  %p475_p4 = scmp.lt.s32.totalorder %s16_s10, %s16_s10 }
   0xa   :  { %p471_p3 = scmp.ne.s32.totalorder %s16_s10, %s470_s18  ;;  %p476_p5 = scmp.lt.s32.totalorder %s470_s18, %s470_s18 }
   0xc   :  { %p477_p6 = por %p476_p5, %p475_p4 }
   0xe   :  { %p478_p7 = pnand %p477_p6, %p471_p3 }
  0x10   :  { %481 = shalt.err (!%p478_p7)
}
  0x11   :  { %s533_s19 = smov 64   ;;  %s534_s20 = smov 4  }
  0x12   :  { %21 = dma.hbm_to_vmem [thread:$0]  %s675_s0, 1024, %s16_s10, [#allocation3], %s533_s19, %s533_s19, %s534_s20  }
  0x13   :  { %26 = vsyncadd [#allocation6], 192  ;;  %s535_s23 = smov [#allocation5]   ;;  %s482_s27 = scalar_lea.hbm %s676_s1, 64 }
  0x14   :  { %s27_s24 = sshll.u32 %s535_s23, 4  ;;  %p483_p8 = scmp.ne.s32.totalorder %s676_s1, %s482_s27  ;;  %s28_s24 = int_to_ptr.vmem [resolvable:$true] %s27_s24 }
  0x15   :  { %p486_p9 = scmp.lt.u32.totalorder %s482_s27, %s676_s1 }
  0x17   :  { %p488_p10 = pnand %p486_p9, %p483_p8 }
  0x19   :  { %491 = shalt.err (!%p488_p10)
}
  0x1a   :  { %s492_s4 = scalar_lea.vmem %s28_s24, 64  ;;  %s496_s0 = scalar_lea.vmem %s28_s24, 256 }
  0x1b   :  { %p493_p11 = scmp.ne.s32.totalorder %s28_s24, %s492_s4  ;;  %p497_p12 = scmp.lt.s32.totalorder %s28_s24, %s28_s24 }
  0x1c   :  { %p498_p13 = scmp.lt.s32.totalorder %s496_s0, %s492_s4 }
  0x1e   :  { %p499_p0 = por %p498_p13, %p497_p12 }
  0x20   :  { %p500_p1 = pnand %p499_p0, %p493_p11 }
  0x22   :  { %503 = shalt.err (!%p500_p1)
}
  0x23   :  { %33 = dma.hbm_to_vmem [thread:$0]  %s676_s1, 64, %s28_s24, [#allocation6], %s533_s19, %s533_s19, %s534_s20  }
  0x24   :  { %526 = dma.done.wait [#allocation3], 1024  }
  0x25   :  { %527 = vsyncadd [#allocation3], 4294966272 }
  0x26   :  { %528 = dma.done.wait [#allocation6], 256  }
  0x27   :  { %529 = vsyncadd [#allocation6], 4294967040  ;;  %v536_v0 = vmov 0.0   ;;  %vm537_vm0 = vmmov 0   ;;  %v590_v1 = vld [vmem:[#allocation2] sm:$0xff]   ;;  %v593_v2 = vld [vmem:[#allocation2 + $0x8] sm:$0xff]  }
  0x28   :  { %357 = vmatprep.subr.bf16.mxu0 %v536_v0  ;;  %373 = vmatprep.mubr.msk.bf16.mxu0 %vm537_vm0, %v536_v0  ;;  %v599_v3 = vld [vmem:[#allocation2 + $0x10] sm:$0xff]   ;;  %v605_v4 = vld [vmem:[#allocation2 + $0x18] sm:$0xff]   ;;  %v611_v5 = vld [vmem:[#allocation2 + $0x20] sm:$0xff]  }
  0x29   :  { %397 = vmatprep.subr.bf16.mxu1 %v536_v0  ;;  %413 = vmatprep.mubr.msk.bf16.mxu1 %vm537_vm0, %v536_v0  ;;  %v41_v6 = vld [vmem:[#allocation5] sm:$0xff]  ;;  %v42_v7 = vld [vmem:[#allocation5 + $0x8] sm:$0xff]  ;;  %v454_v12 = vld [vmem:[#allocation2 + $0x30] sm:$0xff]  }
  0x2a   :  { %358 = vmatpush3.bf16.msra.mxu0 %v590_v1  ;;  %398 = vmatpush3.bf16.msra.mxu1 %v590_v1  ;;  %v59_v8 = vpack.c.bf16 %v42_v7, %v41_v6  ;;  %v617_v9 = vld [vmem:[#allocation2 + $0x28] sm:$0xff]   ;;  %v455_v15 = vld [vmem:[#allocation2 + $0x38] sm:$0xff]  }
  0x2b   :  { %359 = vmatprep.subr.bf16.mxu0 %v536_v0  ;;  %399 = vmatprep.subr.bf16.mxu1 %v536_v0 }
  0x2c   :  { %v60_v10 = vunpack.c.l.bf16 %v59_v8  ;;  %v61_v11 = vunpack.c.h.bf16 %v59_v8 }
  0x2e   :  { %360 = vmatpush3.bf16.msra.mxu0 %v593_v2  ;;  %400 = vmatpush3.bf16.msra.mxu1 %v593_v2  ;;  %v62_v13 = vsub.f32 %v41_v6, %v60_v10  ;;  %v63_v14 = vsub.f32 %v42_v7, %v61_v11 }
  0x2f   :  { %361 = vmatprep.subr.bf16.mxu0 %v536_v0  ;;  %401 = vmatprep.subr.bf16.mxu1 %v536_v0 }
  0x30   :  { %v64_v16 = vpack.c.bf16 %v63_v14, %v62_v13 }
  0x32   :  { %362 = vmatpush3.bf16.msra.mxu0 %v599_v3  ;;  %402 = vmatpush3.bf16.msra.mxu1 %v599_v3 }
  0x33   :  { %363 = vmatprep.subr.bf16.mxu0 %v536_v0  ;;  %403 = vmatprep.subr.bf16.mxu1 %v536_v0 }
  0x36   :  { %364 = vmatpush3.bf16.msra.mxu0 %v605_v4  ;;  %404 = vmatpush3.bf16.msra.mxu1 %v605_v4 }
  0x37   :  { %365 = vmatprep.subr.bf16.mxu0 %v536_v0  ;;  %405 = vmatprep.subr.bf16.mxu1 %v536_v0 }
  0x3a   :  { %366 = vmatpush3.bf16.msra.mxu0 %v611_v5  ;;  %406 = vmatpush3.bf16.msra.mxu1 %v611_v5 }
  0x3b   :  { %367 = vmatprep.subr.bf16.mxu0 %v536_v0  ;;  %407 = vmatprep.subr.bf16.mxu1 %v536_v0 }
  0x3e   :  { %368 = vmatpush3.bf16.msra.mxu0 %v617_v9  ;;  %408 = vmatpush3.bf16.msra.mxu1 %v617_v9 }
  0x3f   :  { %369 = vmatprep.subr.bf16.mxu0 %v536_v0  ;;  %409 = vmatprep.subr.bf16.mxu1 %v536_v0 }
  0x42   :  { %370 = vmatpush3.bf16.msra.mxu0 %v454_v12  ;;  %410 = vmatpush3.bf16.msra.mxu1 %v454_v12 }
  0x43   :  { %371 = vmatprep.subr.bf16.mxu0 %v536_v0  ;;  %411 = vmatprep.subr.bf16.mxu1 %v536_v0 }
  0x46   :  { %372 = vmatpush3.bf16.msra.mxu0 %v455_v15  ;;  %412 = vmatpush3.bf16.msra.mxu1 %v455_v15 }
  0x47   :  { %377 = vmatprep.subr.bf16.mxu0 %v536_v0  ;;  %417 = vmatprep.subr.bf16.mxu1 %v536_v0 }
  0x49   :  { %374 = vmatmul.mubr.bf16.vlgmr.msra.gmra.mrb[0].mxu0 %v64_v16 }
  0x4a   :  { %378 = vmatpush3.bf16.msra.mxu0 %v590_v1  ;;  %393 = vmatprep.mubr.msk.bf16.mxu0 %vm537_vm0, %v536_v0 }
  0x4b   :  { %379 = vmatprep.subr.bf16.mxu0 %v536_v0 }
  0x4e   :  { %380 = vmatpush3.bf16.msra.mxu0 %v593_v2 }
  0x4f   :  { %381 = vmatprep.subr.bf16.mxu0 %v536_v0 }
  0x52   :  { %382 = vmatpush3.bf16.msra.mxu0 %v599_v3 }
  0x53   :  { %383 = vmatprep.subr.bf16.mxu0 %v536_v0 }
  0x56   :  { %384 = vmatpush3.bf16.msra.mxu0 %v605_v4 }
  0x57   :  { %385 = vmatprep.subr.bf16.mxu0 %v536_v0 }
  0x5a   :  { %386 = vmatpush3.bf16.msra.mxu0 %v611_v5 }
  0x5b   :  { %387 = vmatprep.subr.bf16.mxu0 %v536_v0 }
  0x5e   :  { %388 = vmatpush3.bf16.msra.mxu0 %v617_v9 }
  0x5f   :  { %389 = vmatprep.subr.bf16.mxu0 %v536_v0 }
  0x62   :  { %390 = vmatpush3.bf16.msra.mxu0 %v454_v12 }
  0x63   :  { %391 = vmatprep.subr.bf16.mxu0 %v536_v0 }
  0x66   :  { %392 = vmatpush3.bf16.msra.mxu0 %v455_v15 }
  0x69   :  { %394 = vmatmul.mubr.bf16.vlgmr.msra.gmra.mrb[0].mxu0 %v59_v8 }
 0x13c   :  { %v188_v17 = vpop.f32.mrb[0].mxu0 }
 0x13d   :  { %v195_v18 = vsub.f32 %v41_v6, %v188_v17  ;;  %v395_v19 = vpop.f32.mrb[1].mxu0 }
 0x13e   :  { %v191_v20 = vpop.f32.mrb[2].mxu0 }
 0x13f   :  { %v196_v21 = vsub.f32 %v42_v7, %v191_v20  ;;  %v396_v22 = vpop.f32.mrb[3].mxu0  ;;  %v197_v23 = vmul.f32 %v195_v18, %v195_v18 }
 0x141   :  { %v198_v24 = vmul.f32 %v196_v21, %v196_v21 }
 0x143   :  { %v199_v25 = vpack.c.bf16 %v198_v24, %v197_v23 }
 0x145   :  { %v201_v26 = vunpack.c.h.bf16 %v199_v25  ;;  %v200_v27 = vunpack.c.l.bf16 %v199_v25 }
 0x147   :  { %v203_v28 = vsub.f32 %v198_v24, %v201_v26  ;;  %v202_v29 = vsub.f32 %v197_v23, %v200_v27 }
 0x149   :  { %v204_v30 = vpack.c.bf16 %v203_v28, %v202_v29 }
 0x14b   :  { %414 = vmatmul.mubr.bf16.vlgmr.msra.gmra.mrb[0].mxu1 %v204_v30 }
 0x14c   :  { %418 = vmatpush3.bf16.msra.mxu1 %v590_v1  ;;  %433 = vmatprep.mubr.msk.bf16.mxu1 %vm537_vm0, %v536_v0 }
 0x14d   :  { %419 = vmatprep.subr.bf16.mxu1 %v536_v0 }
 0x150   :  { %420 = vmatpush3.bf16.msra.mxu1 %v593_v2 }
 0x151   :  { %421 = vmatprep.subr.bf16.mxu1 %v536_v0 }
 0x154   :  { %422 = vmatpush3.bf16.msra.mxu1 %v599_v3 }
 0x155   :  { %423 = vmatprep.subr.bf16.mxu1 %v536_v0 }
 0x158   :  { %424 = vmatpush3.bf16.msra.mxu1 %v605_v4 }
 0x159   :  { %425 = vmatprep.subr.bf16.mxu1 %v536_v0 }
 0x15c   :  { %426 = vmatpush3.bf16.msra.mxu1 %v611_v5 }
 0x15d   :  { %427 = vmatprep.subr.bf16.mxu1 %v536_v0 }
 0x160   :  { %428 = vmatpush3.bf16.msra.mxu1 %v617_v9 }
 0x161   :  { %429 = vmatprep.subr.bf16.mxu1 %v536_v0 }
 0x164   :  { %430 = vmatpush3.bf16.msra.mxu1 %v454_v12 }
 0x165   :  { %431 = vmatprep.subr.bf16.mxu1 %v536_v0 }
 0x168   :  { %432 = vmatpush3.bf16.msra.mxu1 %v455_v15 }
 0x16b   :  { %434 = vmatmul.mubr.bf16.vlgmr.msra.gmra.mrb[4].mxu1 %v199_v25 }
 0x21e   :  { %v239_v31 = vpop.f32.mrb[0].mxu1 }
 0x21f   :  { %v415_v32 = vpop.f32.mrb[1].mxu1 }
 0x220   :  { %v242_v33 = vpop.f32.mrb[2].mxu1 }
 0x221   :  { %v416_v34 = vpop.f32.mrb[3].mxu1 }
 0x23e   :  { %v280_v35 = vpop.f32.mrb[4].mxu1 }
 0x23f   :  { %v281_v36 = vadd.f32 %v280_v35, %v239_v31  ;;  %v435_v37 = vpop.f32.mrb[5].mxu1 }
 0x240   :  { %v283_v38 = vpop.f32.mrb[6].mxu1 }
 0x241   :  { %v287_v39 = vadd.f32 2.5e-06, %v281_v36  ;;  %v284_v40 = vadd.f32 %v283_v38, %v242_v33  ;;  %v436_v41 = vpop.f32.mrb[7].mxu1 }
 0x243   :  { %456 = vrsqrt.f32 %v287_v39  ;;  %v288_v42 = vadd.f32 2.5e-06, %v284_v40 }
 0x245   :  { %458 = vrsqrt.f32 %v288_v42 }
 0x24d   :  { %v457_v43 = vpop.eup %456 }
 0x24e   :  { %v291_v44 = vmul.f32 %v457_v43, %v195_v18 }
 0x24f   :  { %v459_v45 = vpop.eup %458 }
 0x250   :  { %293 = vst [vmem:[#allocation7] sm:$0xff] %v291_v44  ;;  %v292_v46 = vmul.f32 %v459_v45, %v196_v21 }
 0x252   :  { %294 = vst [vmem:[#allocation7 + $0x8] sm:$0xff] %v292_v46 }
 0x253   :  { %299 = vsyncadd [#allocation4], 192  ;;  %s538_s1 = smov [#allocation7]  }
 0x254   :  { %s300_s7 = sshll.u32 %s538_s1, 4  ;;  %s301_s7 = int_to_ptr.vmem [resolvable:$true] %s300_s7 }
 0x255   :  { %s504_s8 = scalar_lea.vmem %s301_s7, 64  ;;  %s508_s9 = scalar_lea.vmem %s301_s7, 256 }
 0x256   :  { %p505_p2 = scmp.ne.s32.totalorder %s301_s7, %s504_s8  ;;  %p509_p3 = scmp.lt.s32.totalorder %s301_s7, %s301_s7 }
 0x257   :  { %p510_p4 = scmp.lt.s32.totalorder %s508_s9, %s504_s8 }
 0x259   :  { %p511_p5 = por %p510_p4, %p509_p3 }
 0x25b   :  { %p512_p6 = pnand %p511_p5, %p505_p2 }
 0x25d   :  { %515 = shalt.err (!%p512_p6)
}
 0x25e   :  { %s516_s12 = scalar_lea.hbm %s677_s2, 64 }
 0x25f   :  { %p517_p7 = scmp.ne.s32.totalorder %s677_s2, %s516_s12  ;;  %p520_p8 = scmp.lt.u32.totalorder %s516_s12, %s677_s2 }
 0x261   :  { %p522_p9 = pnand %p520_p8, %p517_p7 }
 0x263   :  { %525 = shalt.err (!%p522_p9)
}
 0x264   :  { %306 = dma.vmem_to_hbm [thread:$0]  %s301_s7, 64, %s677_s2, [#allocation4], %s533_s19, %s533_s19, %s534_s20  }
 0x265   :  { %530 = dma.done.wait [#allocation4], 256  }
 0x266   :  { %531 = vsyncadd [#allocation4], 4294967040 }
 0x267   :  { %310 = vsyncpa [#allocation3], 1 }
 0x268   :  { %311 = vsyncpa [#allocation6], 1 }
 0x269   :  { %312 = vsyncpa [#allocation4], 1 }

</bundles_post_ra>
